<compile_context>
chip_gen: v7x
topology: tpu7x:2x2x1
jax: 0.10.0
libtpu: 0.0.40
codegen_flags: <defaults>
</compile_context>

<pallas_src>
import functools

import jax
import jax.numpy as jnp
from jax import lax
from jax.experimental import pallas as pl
from jax.experimental.pallas import tpu as pltpu


def _round_up(v, m):
    return (v + m - 1) // m * m


def _linear_kernel(seed_ref, x_ref, w_ref, *rest,
                   dropout_rate: float, apply_dropout: bool, use_bias: bool):
    if use_bias:
        b_ref, o_ref, acc_ref = rest
    else:
        o_ref, acc_ref = rest

    k_step = pl.program_id(2)
    nk = pl.num_programs(2)

    @pl.when(k_step == 0)
    def _():
        acc_ref[...] = jnp.zeros_like(acc_ref)

    x = x_ref[...]                                   # (tm, tk), native dtype

    if apply_dropout:
        # Seed keyed on the (m, k) tile of x so the mask is consistent across
        # the N axis and distinct across x tiles.
        pltpu.prng_seed(seed_ref[0] + pl.program_id(0) * nk + k_step)
        bits = pltpu.prng_random_bits(x.shape)
        if bits.dtype != jnp.uint32:
            bits = pltpu.bitcast(bits, jnp.uint32)
        threshold = min(int(round(dropout_rate * (1 << 32))), (1 << 32) - 1)
        keep = bits >= jnp.uint32(threshold)         # P(keep) = 1 - p
        inv_keep = 1.0 / (1.0 - dropout_rate)
        x = jnp.where(keep, x * jnp.asarray(inv_keep, dtype=x.dtype),
                      jnp.zeros_like(x))
        # TODO(synk): in-kernel PRNG will not match PyTorch's RNG stream
        # bit-for-bit (same keep probability / scaling, different mask).

    # x: (tm, tk), w: (tn, tk)  -> contract over K (weight stays in (N, K)
    # PyTorch layout; no HBM transpose in the wrapper). f32 accumulation.
    acc_ref[...] += lax.dot_general(
        x, w_ref[...],
        dimension_numbers=(((1,), (1,)), ((), ())),
        preferred_element_type=jnp.float32)

    @pl.when(k_step == nk - 1)
    def _():
        y = acc_ref[...]
        if use_bias:
            y = y + b_ref[...].astype(jnp.float32)   # (1, tn) broadcasts
        o_ref[...] = y.astype(o_ref.dtype)


def linear_forward(x, weight, bias=None, *, dropout_rate=0.0, training=False,
                   seed=0, tm=256, tn=512, tk=512):
    """x: [..., K], weight: PyTorch layout (N, K), bias: (N,) or None."""
    *lead, k = x.shape
    n = weight.shape[0]
    m = 1
    for d in lead:
        m *= d

    x2d = x.reshape(m, k)

    # Tile sizes: cap to the 128-rounded problem size, then pad the operands
    # once so every tile is (8,128)-aligned and lane-dense.
    tm = min(tm, _round_up(m, 128))
    tn = min(tn, _round_up(n, 128))
    tk = min(tk, _round_up(k, 128))
    m_pad = _round_up(m, tm)
    n_pad = _round_up(n, tn)
    k_pad = _round_up(k, tk)

    if (m_pad, k_pad) != (m, k):
        x2d = jnp.pad(x2d, ((0, m_pad - m), (0, k_pad - k)))
    w = weight
    if (n_pad, k_pad) != (n, k):
        w = jnp.pad(w, ((0, n_pad - n), (0, k_pad - k)))

    use_bias = bias is not None
    apply_dropout = (float(dropout_rate) > 0.0) and bool(training)

    grid = (m_pad // tm, n_pad // tn, k_pad // tk)

    in_specs = [
        pl.BlockSpec((tm, tk), lambda i, j, kk, s: (i, kk)),   # x
        pl.BlockSpec((tn, tk), lambda i, j, kk, s: (j, kk)),   # weight (N, K)
    ]
    args = [x2d, w]
    if use_bias:
        b2d = bias.reshape(1, n)
        if n_pad != n:
            b2d = jnp.pad(b2d, ((0, 0), (0, n_pad - n)))
        in_specs.append(pl.BlockSpec((1, tn), lambda i, j, kk, s: (0, j)))
        args.append(b2d)

    kernel = functools.partial(
        _linear_kernel,
        dropout_rate=float(dropout_rate),
        apply_dropout=apply_dropout,
        use_bias=use_bias,
    )

    seed_arr = jnp.asarray([seed], dtype=jnp.int32)

    out_dtype = x.dtype
    flops = 2 * m_pad * n_pad * k_pad
    bytes_accessed = (x2d.size * x2d.dtype.itemsize
                      + w.size * w.dtype.itemsize
                      + m_pad * n_pad * jnp.dtype(out_dtype).itemsize)

    out = pl.pallas_call(
        kernel,
        out_shape=jax.ShapeDtypeStruct((m_pad, n_pad), out_dtype),
        grid_spec=pltpu.PrefetchScalarGridSpec(
            num_scalar_prefetch=1,
            grid=grid,
            in_specs=in_specs,
            out_specs=pl.BlockSpec((tm, tn), lambda i, j, kk, s: (i, j)),
            scratch_shapes=[pltpu.VMEM((tm, tn), jnp.float32)],
        ),
        compiler_params=pltpu.CompilerParams(
            dimension_semantics=("parallel", "parallel", "arbitrary"),
        ),
        cost_estimate=pl.CostEstimate(
            flops=int(flops), transcendentals=0,
            bytes_accessed=int(bytes_accessed)),
    )(seed_arr, *args)

    out = out[:m, :n]
    return out.reshape(*lead, n)


if __name__ == "__main__":
    # Module config: Linear(input_dim=32, output_dim=64, bias=True, dropout_rate=0.0)
    input_dim, output_dim = 32, 64
    batch, seq = 2, 8

    key = jax.random.PRNGKey(0)
    kx, kw, kb = jax.random.split(key, 3)

    x = jax.random.normal(kx, (batch, seq, input_dim), dtype=jnp.float32)
    # Deterministic init mimicking nn.Linear's uniform(-1/sqrt(K), 1/sqrt(K)).
    bound = 1.0 / jnp.sqrt(jnp.float32(input_dim))
    weight = jax.random.uniform(kw, (output_dim, input_dim),
                                minval=-bound, maxval=bound, dtype=jnp.float32)
    bias = jax.random.uniform(kb, (output_dim,),
                              minval=-bound, maxval=bound, dtype=jnp.float32)

    # dropout_rate=0.0 (module default) and eval mode -> dropout is identity.
    out = linear_forward(x, weight, bias, dropout_rate=0.0, training=False)
    out = jax.block_until_ready(out)

    # Sanity-check against plain JAX reference.
    ref = x @ weight.T + bias
    assert out.shape == (batch, seq, output_dim)
    assert jnp.allclose(out, ref, atol=1e-5, rtol=1e-5)

    # Exercise a larger, padded, multi-tile shape to check the grid path.
    x2 = jax.random.normal(kx, (4, 96, 384), dtype=jnp.float32)
    w2 = jax.random.normal(kw, (640, 384), dtype=jnp.float32) * 0.05
    b2 = jax.random.normal(kb, (640,), dtype=jnp.float32) * 0.05
    out2 = jax.block_until_ready(
        linear_forward(x2, w2, b2, dropout_rate=0.0, training=False))
    ref2 = x2 @ w2.T + b2
    assert jnp.allclose(out2, ref2, atol=1e-3, rtol=1e-3)

    print("KERNEL_OK")
</pallas_src>

<mosaic_0001>
module attributes {stable_mosaic.version = 11 : i64} {
  func.func @_linear_kernel(%arg0: i32, %arg1: i32, %arg2: i32, %arg3: memref<1xi32, #tpu.memory_space<smem>>, %arg4: memref<128x128xf32, #tpu.memory_space<vmem>>, %arg5: memref<128x128xf32, #tpu.memory_space<vmem>>, %arg6: memref<1x128xf32, #tpu.memory_space<vmem>>, %arg7: memref<128x128xf32, #tpu.memory_space<vmem>>, %arg8: memref<128x128xf32, #tpu.memory_space<vmem>>) attributes {dimension_semantics = [#tpu.dimension_semantics<parallel>, #tpu.dimension_semantics<parallel>, #tpu.dimension_semantics<arbitrary>], iteration_bounds = array<i64: 1, 1, 1>, scalar_prefetch = 1 : i64, scratch_operands = 1 : i64, tpu.core_type = #tpu.core_type<tc>, window_params = [{transform_indices = @transform_0, window_bounds = array<i64: 128, 128>}, {transform_indices = @transform_1, window_bounds = array<i64: 128, 128>}, {transform_indices = @transform_2, window_bounds = array<i64: 1, 128>}, {transform_indices = @transform_3, window_bounds = array<i64: 128, 128>}]} {
    %c0_i32 = arith.constant 0 : i32
    %0 = arith.cmpi eq, %arg2, %c0_i32 : i32
    %1 = arith.extui %0 : i1 to i32
    %c0_i32_0 = arith.constant 0 : i32
    %2 = arith.cmpi ne, %1, %c0_i32_0 : i32
    scf.if %2 {
      %cst_10 = arith.constant 0.000000e+00 : f32
      %12 = vector.broadcast %cst_10 : f32 to vector<128x128xf32>
      %c0_11 = arith.constant 0 : index
      %c0_12 = arith.constant 0 : index
      %13 = vector.load %arg8[%c0_11, %c0_12] : memref<128x128xf32, #tpu.memory_space<vmem>>, vector<128x128xf32>
      tpu.vector_store %arg8[%c0_11, %c0_12], %12 {strides = array<i32>} : memref<128x128xf32, #tpu.memory_space<vmem>>, vector<128x128xf32>,
    } else {
    }
    %c0 = arith.constant 0 : index
    %c0_1 = arith.constant 0 : index
    %3 = vector.load %arg4[%c0, %c0_1] : memref<128x128xf32, #tpu.memory_space<vmem>>, vector<128x128xf32>
    %c0_2 = arith.constant 0 : index
    %c0_3 = arith.constant 0 : index
    %4 = vector.load %arg8[%c0_2, %c0_3] : memref<128x128xf32, #tpu.memory_space<vmem>>, vector<128x128xf32>
    %c0_4 = arith.constant 0 : index
    %c0_5 = arith.constant 0 : index
    %5 = vector.load %arg5[%c0_4, %c0_5] : memref<128x128xf32, #tpu.memory_space<vmem>>, vector<128x128xf32>
    %cst = arith.constant dense<0.000000e+00> : vector<128x128xf32>
    %6 = tpu.matmul %3, %5, %cst {dimension_numbers = #tpu.dot_dimension_numbers<[1], [1], [0], [0], [0, 0, 1, 0], [], []>} : vector<128x128xf32>, vector<128x128xf32>, vector<128x128xf32> -> vector<128x128xf32>
    %7 = arith.addf %4, %6 : vector<128x128xf32>
    %c0_6 = arith.constant 0 : index
    %c0_7 = arith.constant 0 : index
    %8 = vector.load %arg8[%c0_6, %c0_7] : memref<128x128xf32, #tpu.memory_space<vmem>>, vector<128x128xf32>
    tpu.vector_store %arg8[%c0_6, %c0_7], %7 {strides = array<i32>} : memref<128x128xf32, #tpu.memory_space<vmem>>, vector<128x128xf32>,
    %c0_i32_8 = arith.constant 0 : i32
    %9 = arith.cmpi eq, %arg2, %c0_i32_8 : i32
    %10 = arith.extui %9 : i1 to i32
    %c0_i32_9 = arith.constant 0 : i32
    %11 = arith.cmpi ne, %10, %c0_i32_9 : i32
    scf.if %11 {
      %c0_10 = arith.constant 0 : index
      %c0_11 = arith.constant 0 : index
      %12 = vector.load %arg8[%c0_10, %c0_11] : memref<128x128xf32, #tpu.memory_space<vmem>>, vector<128x128xf32>
      %c0_12 = arith.constant 0 : index
      %c0_13 = arith.constant 0 : index
      %13 = vector.load %arg6[%c0_12, %c0_13] : memref<1x128xf32, #tpu.memory_space<vmem>>, vector<1x128xf32>
      %14 = vector.broadcast %13 : vector<1x128xf32> to vector<128x128xf32>
      %15 = arith.addf %12, %14 : vector<128x128xf32>
      %c0_14 = arith.constant 0 : index
      %c0_15 = arith.constant 0 : index
      %16 = vector.load %arg7[%c0_14, %c0_15] : memref<128x128xf32, #tpu.memory_space<vmem>>, vector<128x128xf32>
      tpu.vector_store %arg7[%c0_14, %c0_15], %15 {strides = array<i32>} : memref<128x128xf32, #tpu.memory_space<vmem>>, vector<128x128xf32>,
    } else {
    }
    return
  }
  func.func @transform_0(%arg0: i32, %arg1: i32, %arg2: i32, %arg3: memref<1xi32, #tpu.memory_space<smem>>) -> (i32, i32) {
    %c0_i32 = arith.constant 0 : i32
    return %arg0, %arg2 : i32, i32
  }
  func.func @transform_1(%arg0: i32, %arg1: i32, %arg2: i32, %arg3: memref<1xi32, #tpu.memory_space<smem>>) -> (i32, i32) {
    %c0_i32 = arith.constant 0 : i32
    return %arg1, %arg2 : i32, i32
  }
  func.func @transform_2(%arg0: i32, %arg1: i32, %arg2: i32, %arg3: memref<1xi32, #tpu.memory_space<smem>>) -> (i32, i32) {
    %c0_i32 = arith.constant 0 : i32
    %c0_i32_0 = arith.constant 0 : i32
    return %c0_i32, %arg1 : i32, i32
  }
  func.func @transform_3(%arg0: i32, %arg1: i32, %arg2: i32, %arg3: memref<1xi32, #tpu.memory_space<smem>>) -> (i32, i32) {
    %c0_i32 = arith.constant 0 : i32
    return %arg0, %arg1 : i32, i32
  }
}

</mosaic_0001>

<bundles_post_ra>
// kernel: tpu_custom_call.1
= control target key start
LH: loop header
LB: loop body
LE: loop exit
PB: predicated region body
PF: predicated region fallthrough
CT: control target
= control target key end

     0   :  { %10 = vsyncpa [#allocation6], 0  ;;  %s658_s0 = inlined_call_operand.<no memory space> [shape: s32[1], index: 0, kind: input, shape index: {}]   ;;  %s659_s1 = inlined_call_operand.hbm [shape: f32[128,128], index: 1, kind: input, shape index: {}]   ;;  %s660_s2 = inlined_call_operand.hbm [shape: f32[128,128], index: 2, kind: input, shape index: {}]   ;;  %s661_s3 = inlined_call_operand.vmem [shape: f32[1,128], index: 3, kind: input, shape index: {}]   ;;  %s662_s4 = inlined_call_operand.hbm [shape: f32[128,128], index: 4, kind: output, shape index: {}]  }
   0x1   :  { %11 = vsyncpa [#allocation9], 0 }
   0x2   :  { %12 = vsyncpa [#allocation7], 0  ;;  %s580_s15 = smov [#allocation5]   ;;  %s508_s18 = scalar_lea.hbm %s659_s1, 2048 }
   0x3   :  { %s18_s16 = sshll.u32 %s580_s15, 4  ;;  %p509_p0 = scmp.ne.s32.totalorder %s659_s1, %s508_s18  ;;  %s19_s16 = int_to_ptr.vmem [resolvable:$true] %s18_s16 }
   0x4   :  { %p512_p1 = scmp.lt.u32.totalorder %s508_s18, %s659_s1 }
   0x6   :  { %p514_p2 = pnand %p512_p1, %p509_p0 }
   0x8   :  { %517 = shalt.err (!%p514_p2)
}
   0x9   :  { %s518_s23 = scalar_lea.vmem %s19_s16, 2048  ;;  %p523_p4 = scmp.lt.s32.totalorder %s19_s16, %s19_s16 }
   0xa   :  { %p519_p3 = scmp.ne.s32.totalorder %s19_s16, %s518_s23  ;;  %p524_p5 = scmp.lt.s32.totalorder %s518_s23, %s518_s23 }
   0xc   :  { %p525_p6 = por %p524_p5, %p523_p4 }
   0xe   :  { %p526_p7 = pnand %p525_p6, %p519_p3 }
  0x10   :  { %529 = shalt.err (!%p526_p7)
}
  0x11   :  { %s581_s24 = smov 128   ;;  %s582_s25 = smov 8  }
  0x12   :  { %24 = dma.hbm_to_vmem [thread:$0]  %s659_s1, 2048, %s19_s16, [#allocation6], %s581_s24, %s581_s24, %s582_s25  }
  0x13   :  { %s583_s28 = smov [#allocation8]   ;;  %s530_s6 = scalar_lea.hbm %s660_s2, 2048 }
  0x14   :  { %s30_s29 = sshll.u32 %s583_s28, 4  ;;  %p531_p8 = scmp.ne.s32.totalorder %s660_s2, %s530_s6  ;;  %s31_s29 = int_to_ptr.vmem [resolvable:$true] %s30_s29 }
  0x15   :  { %p534_p9 = scmp.lt.u32.totalorder %s530_s6, %s660_s2 }
  0x17   :  { %p536_p10 = pnand %p534_p9, %p531_p8 }
  0x19   :  { %539 = shalt.err (!%p536_p10)
}
  0x1a   :  { %s540_s11 = scalar_lea.vmem %s31_s29, 2048  ;;  %p545_p12 = scmp.lt.s32.totalorder %s31_s29, %s31_s29 }
  0x1b   :  { %p541_p11 = scmp.ne.s32.totalorder %s31_s29, %s540_s11  ;;  %p546_p13 = scmp.lt.s32.totalorder %s540_s11, %s540_s11 }
  0x1d   :  { %p547_p0 = por %p546_p13, %p545_p12 }
  0x1f   :  { %p548_p1 = pnand %p547_p0, %p541_p11 }
  0x21   :  { %551 = shalt.err (!%p548_p1)
}
  0x22   :  { %36 = dma.hbm_to_vmem [thread:$0]  %s660_s2, 2048, %s31_s29, [#allocation9], %s581_s24, %s581_s24, %s582_s25  }
  0x23   :  { %574 = dma.done.wait [#allocation6], 2048  }
  0x24   :  { %575 = vsyncadd [#allocation6], 4294965248 }
  0x25   :  { %576 = dma.done.wait [#allocation9], 2048  }
  0x26   :  { %577 = vsyncadd [#allocation9], 4294965248  ;;  %v97_v0 = vld [vmem:[#allocation8] sm:$0xff]  ;;  %v98_v1 = vld [vmem:[#allocation8 + $0x8] sm:$0xff] }
  0x27   :  { %v99_v2 = vld [vmem:[#allocation8 + $0x10] sm:$0xff]  ;;  %v455_v3 = vpack.c.bf16 %v98_v1, %v97_v0  ;;  %v100_v4 = vld [vmem:[#allocation8 + $0x18] sm:$0xff]  ;;  %v65_v6 = vld [vmem:[#allocation5] sm:$0xff] }
  0x28   :  { %v459_v5 = vpack.c.bf16 %v100_v4, %v99_v2  ;;  %v73_v7 = vld [vmem:[#allocation5 + $0x40] sm:$0xff]  ;;  %v102_v9 = vld [vmem:[#allocation8 + $0x28] sm:$0xff]  ;;  %431 = vmatprep.mubr.f32.mxu0 %v65_v6  ;;  %v103_v11 = vld [vmem:[#allocation8 + $0x30] sm:$0xff] }
  0x29   :  { %456 = vmatprep.subr.bf16.mxu0 %v455_v3  ;;  %487 = vmatprep.subr.bf16.mxu1 %v455_v3  ;;  %v101_v8 = vld [vmem:[#allocation8 + $0x20] sm:$0xff]  ;;  %v104_v12 = vld [vmem:[#allocation8 + $0x38] sm:$0xff]  ;;  %v106_v15 = vld [vmem:[#allocation8 + $0x48] sm:$0xff] }
  0x2a   :  { %458 = vmatpush3.bf16.xpose.msra.mxu0 %v455_v3  ;;  %495 = vmatpush3.bf16.xpose.msra.mxu1 %v455_v3  ;;  %v463_v10 = vpack.c.bf16 %v102_v9, %v101_v8  ;;  %v467_v13 = vpack.c.bf16 %v104_v12, %v103_v11  ;;  %v105_v14 = vld [vmem:[#allocation8 + $0x40] sm:$0xff]  ;;  %v107_v17 = vld [vmem:[#allocation8 + $0x50] sm:$0xff]  ;;  %v108_v18 = vld [vmem:[#allocation8 + $0x58] sm:$0xff] }
  0x2b   :  { %460 = vmatprep.subr.bf16.mxu0 %v459_v5  ;;  %488 = vmatprep.subr.bf16.mxu1 %v459_v5  ;;  %v471_v16 = vpack.c.bf16 %v106_v15, %v105_v14  ;;  %v475_v19 = vpack.c.bf16 %v108_v18, %v107_v17  ;;  %v109_v20 = vld [vmem:[#allocation8 + $0x60] sm:$0xff]  ;;  %v110_v21 = vld [vmem:[#allocation8 + $0x68] sm:$0xff]  ;;  %v111_v23 = vld [vmem:[#allocation8 + $0x70] sm:$0xff] }
  0x2c   :  { %443 = vmatprep.mubr.f32.mxu1 %v73_v7  ;;  %v479_v22 = vpack.c.bf16 %v110_v21, %v109_v20  ;;  %v112_v24 = vld [vmem:[#allocation8 + $0x78] sm:$0xff]  ;;  %v66_v26 = vld [vmem:[#allocation5 + $0x8] sm:$0xff]  ;;  %v67_v28 = vld [vmem:[#allocation5 + $0x10] sm:$0xff] }
  0x2d   :  { %v483_v25 = vpack.c.bf16 %v112_v24, %v111_v23  ;;  %v74_v27 = vld [vmem:[#allocation5 + $0x48] sm:$0xff]  ;;  %v75_v29 = vld [vmem:[#allocation5 + $0x50] sm:$0xff]  ;;  %v68_v30 = vld [vmem:[#allocation5 + $0x18] sm:$0xff] }
  0x2e   :  { %v76_v31 = vld [vmem:[#allocation5 + $0x58] sm:$0xff]  ;;  %v69_v32 = vld [vmem:[#allocation5 + $0x20] sm:$0xff]  ;;  %v70_v34 = vld [vmem:[#allocation5 + $0x28] sm:$0xff] }
  0x2f   :  { %v77_v33 = vld [vmem:[#allocation5 + $0x60] sm:$0xff]  ;;  %v78_v35 = vld [vmem:[#allocation5 + $0x68] sm:$0xff]  ;;  %v71_v36 = vld [vmem:[#allocation5 + $0x30] sm:$0xff] }
  0x30   :  { %v79_v37 = vld [vmem:[#allocation5 + $0x70] sm:$0xff]  ;;  %v72_v38 = vld [vmem:[#allocation5 + $0x38] sm:$0xff]  ;;  %v366_v40 = vld [vmem:[%s661_s3] ss:$0 sm:$0xff]  ;;  %s584_s3 = smov [#allocation10]  }
  0x31   :  { %v80_v39 = vld [vmem:[#allocation5 + $0x78] sm:$0xff]  ;;  %s353_s14 = sshll.u32 %s584_s3, 4  ;;  %s354_s14 = int_to_ptr.vmem [resolvable:$true] %s353_s14 }
  0x32   :  { %462 = vmatpush3.bf16.xpose.msra.mxu0 %v459_v5  ;;  %496 = vmatpush3.bf16.xpose.msra.mxu1 %v459_v5  ;;  %s552_s15 = scalar_lea.vmem %s354_s14, 2048  ;;  %p557_p3 = scmp.lt.s32.totalorder %s354_s14, %s354_s14 }
  0x33   :  { %464 = vmatprep.subr.bf16.mxu0 %v463_v10  ;;  %489 = vmatprep.subr.bf16.mxu1 %v463_v10  ;;  %p553_p2 = scmp.ne.s32.totalorder %s354_s14, %s552_s15  ;;  %p558_p4 = scmp.lt.s32.totalorder %s552_s15, %s552_s15 }
  0x35   :  { %p559_p5 = por %p558_p4, %p557_p3 }
  0x37   :  { %p560_p6 = pnand %p559_p5, %p553_p2 }
  0x3a   :  { %466 = vmatpush3.bf16.xpose.msra.mxu0 %v463_v10  ;;  %497 = vmatpush3.bf16.xpose.msra.mxu1 %v463_v10 }
  0x3b   :  { %468 = vmatprep.subr.bf16.mxu0 %v467_v13  ;;  %490 = vmatprep.subr.bf16.mxu1 %v467_v13 }
  0x42   :  { %470 = vmatpush3.bf16.xpose.msra.mxu0 %v467_v13  ;;  %498 = vmatpush3.bf16.xpose.msra.mxu1 %v467_v13 }
  0x43   :  { %472 = vmatprep.subr.bf16.mxu0 %v471_v16  ;;  %491 = vmatprep.subr.bf16.mxu1 %v471_v16 }
  0x4a   :  { %474 = vmatpush3.bf16.xpose.msra.mxu0 %v471_v16  ;;  %499 = vmatpush3.bf16.xpose.msra.mxu1 %v471_v16 }
  0x4b   :  { %476 = vmatprep.subr.bf16.mxu0 %v475_v19  ;;  %492 = vmatprep.subr.bf16.mxu1 %v475_v19 }
  0x52   :  { %478 = vmatpush3.bf16.xpose.msra.mxu0 %v475_v19  ;;  %500 = vmatpush3.bf16.xpose.msra.mxu1 %v475_v19 }
  0x53   :  { %480 = vmatprep.subr.bf16.mxu0 %v479_v22  ;;  %493 = vmatprep.subr.bf16.mxu1 %v479_v22 }
  0x5a   :  { %482 = vmatpush3.bf16.xpose.msra.mxu0 %v479_v22  ;;  %501 = vmatpush3.bf16.xpose.msra.mxu1 %v479_v22 }
  0x5b   :  { %484 = vmatprep.subr.bf16.mxu0 %v483_v25  ;;  %494 = vmatprep.subr.bf16.mxu1 %v483_v25 }
  0x62   :  { %486 = vmatpush3.bf16.xpose.msra.mxu0 %v483_v25  ;;  %502 = vmatpush3.bf16.xpose.msra.mxu1 %v483_v25 }
  0x69   :  { %432 = vmatmul.mubr.f32.vlgmr.msra.gmra.mrb[0].mxu0 %v66_v26  ;;  %444 = vmatmul.mubr.f32.vlgmr.msra.gmra.mrb[0].mxu1 %v74_v27 }
  0x6a   :  { %434 = vmatprep.mubr.f32.mxu0 %v67_v28  ;;  %446 = vmatprep.mubr.f32.mxu1 %v75_v29 }
  0x6d   :  { %435 = vmatmul.mubr.f32.gmra.mrb[2].mxu0 %v68_v30  ;;  %447 = vmatmul.mubr.f32.gmra.mrb[2].mxu1 %v76_v31 }
  0x6e   :  { %437 = vmatprep.mubr.f32.mxu0 %v69_v32  ;;  %449 = vmatprep.mubr.f32.mxu1 %v77_v33 }
  0x71   :  { %438 = vmatmul.mubr.f32.gmra.mrb[4].mxu0 %v70_v34  ;;  %450 = vmatmul.mubr.f32.gmra.mrb[4].mxu1 %v78_v35 }
  0x72   :  { %440 = vmatprep.mubr.f32.mxu0 %v71_v36  ;;  %452 = vmatprep.mubr.f32.mxu1 %v79_v37 }
  0x75   :  { %441 = vmatmul.mubr.f32.gmra.mrb[6].mxu0 %v72_v38  ;;  %453 = vmatmul.mubr.f32.gmra.mrb[6].mxu1 %v80_v39 }
 0x13c   :  { %v433_v41 = vpop.f32.mrb[0].mxu0  ;;  %v445_v42 = vpop.f32.mrb[0].mxu1 }
 0x13d   :  { %v317_v43 = vadd.f32 %v433_v41, %v366_v40  ;;  %v325_v44 = vadd.f32 %v445_v42, %v366_v40  ;;  %v179_v45 = vpop.f32.mrb[1].mxu0  ;;  %v219_v46 = vpop.f32.mrb[1].mxu1 }
 0x13e   :  { %v316_v47 = vadd.f32 %v366_v40, %v179_v45  ;;  %v324_v48 = vadd.f32 %v366_v40, %v219_v46 }
 0x13f   :  { %333 = vst [vmem:[#allocation10 + $0x8] sm:$0xff] %v317_v43  ;;  %341 = vst [vmem:[#allocation10 + $0x48] sm:$0xff] %v325_v44 }
 0x140   :  { %332 = vst [vmem:[#allocation10] sm:$0xff] %v316_v47  ;;  %340 = vst [vmem:[#allocation10 + $0x40] sm:$0xff] %v324_v48  ;;  %v436_v49 = vpop.f32.mrb[2].mxu0  ;;  %v448_v50 = vpop.f32.mrb[2].mxu1 }
 0x141   :  { %v319_v51 = vadd.f32 %v436_v49, %v366_v40  ;;  %v327_v52 = vadd.f32 %v448_v50, %v366_v40  ;;  %v189_v53 = vpop.f32.mrb[3].mxu0  ;;  %v229_v54 = vpop.f32.mrb[3].mxu1 }
 0x142   :  { %v318_v55 = vadd.f32 %v366_v40, %v189_v53  ;;  %v326_v56 = vadd.f32 %v366_v40, %v229_v54 }
 0x143   :  { %335 = vst [vmem:[#allocation10 + $0x18] sm:$0xff] %v319_v51  ;;  %343 = vst [vmem:[#allocation10 + $0x58] sm:$0xff] %v327_v52 }
 0x144   :  { %334 = vst [vmem:[#allocation10 + $0x10] sm:$0xff] %v318_v55  ;;  %342 = vst [vmem:[#allocation10 + $0x50] sm:$0xff] %v326_v56  ;;  %v439_v57 = vpop.f32.mrb[4].mxu0  ;;  %v451_v58 = vpop.f32.mrb[4].mxu1 }
 0x145   :  { %v321_v59 = vadd.f32 %v439_v57, %v366_v40  ;;  %v329_v60 = vadd.f32 %v451_v58, %v366_v40  ;;  %v199_v61 = vpop.f32.mrb[5].mxu0  ;;  %v239_v62 = vpop.f32.mrb[5].mxu1 }
 0x146   :  { %v320_v63 = vadd.f32 %v366_v40, %v199_v61  ;;  %v328_v0 = vadd.f32 %v366_v40, %v239_v62 }
 0x147   :  { %337 = vst [vmem:[#allocation10 + $0x28] sm:$0xff] %v321_v59  ;;  %345 = vst [vmem:[#allocation10 + $0x68] sm:$0xff] %v329_v60 }
 0x148   :  { %336 = vst [vmem:[#allocation10 + $0x20] sm:$0xff] %v320_v63  ;;  %344 = vst [vmem:[#allocation10 + $0x60] sm:$0xff] %v328_v0  ;;  %v442_v1 = vpop.f32.mrb[6].mxu0  ;;  %v454_v2 = vpop.f32.mrb[6].mxu1 }
 0x149   :  { %v323_v3 = vadd.f32 %v442_v1, %v366_v40  ;;  %v331_v4 = vadd.f32 %v454_v2, %v366_v40  ;;  %v209_v5 = vpop.f32.mrb[7].mxu0  ;;  %v249_v6 = vpop.f32.mrb[7].mxu1 }
 0x14a   :  { %v322_v7 = vadd.f32 %v366_v40, %v209_v5  ;;  %v330_v8 = vadd.f32 %v366_v40, %v249_v6 }
 0x14b   :  { %339 = vst [vmem:[#allocation10 + $0x38] sm:$0xff] %v323_v3  ;;  %347 = vst [vmem:[#allocation10 + $0x78] sm:$0xff] %v331_v4 }
 0x14c   :  { %338 = vst [vmem:[#allocation10 + $0x30] sm:$0xff] %v322_v7  ;;  %346 = vst [vmem:[#allocation10 + $0x70] sm:$0xff] %v330_v8 }
 0x14d   :  { %563 = shalt.err (!%p560_p6)
}
 0x14e   :  { %s564_s0 = scalar_lea.hbm %s662_s4, 2048 }
 0x14f   :  { %p565_p7 = scmp.ne.s32.totalorder %s662_s4, %s564_s0  ;;  %p568_p8 = scmp.lt.u32.totalorder %s564_s0, %s662_s4 }
 0x151   :  { %p570_p9 = pnand %p568_p8, %p565_p7 }
 0x153   :  { %573 = shalt.err (!%p570_p9)
}
 0x154   :  { %359 = dma.vmem_to_hbm [thread:$0]  %s354_s14, 2048, %s662_s4, [#allocation7], %s581_s24, %s581_s24, %s582_s25  }
 0x155   :  { %578 = dma.done.wait [#allocation7], 2048  }
 0x156   :  { %579 = vsyncadd [#allocation7], 4294965248 }
 0x157   :  { %363 = vsyncpa [#allocation6], 1 }
 0x158   :  { %364 = vsyncpa [#allocation9], 1 }
 0x159   :  { %365 = vsyncpa [#allocation7], 1 }

</bundles_post_ra>
